<compile_context>
chip_gen: v7x
topology: tpu7x:2x2x1
jax: 0.10.0
libtpu: 0.0.40
codegen_flags: <defaults>
</compile_context>

<pallas_src>
import jax
import jax.numpy as jnp
from jax import lax
from jax.experimental import pallas as pl
from jax.experimental.pallas import tpu as pltpu

_EPS = 1e-12
_NEG_BIAS = 1e9


def _round_up(x, m):
    return ((x + m - 1) // m) * m


def _make_bertscore_kernel(pair_tile, lc, lr, d):
    """BERTScore F1 for PAIR_TILE pre-normalized candidates vs one shared ref."""

    def kernel(src_lens_ref, cmask_ref, cand_ref, ref_ref, out_ref):
        b = pl.program_id(0)

        # Reference mask from its length (SMEM scalar prefetch) via iota compare.
        src_len = src_lens_ref[b]
        rm = (lax.broadcasted_iota(jnp.int32, (1, lr), 1) < src_len).astype(
            jnp.float32)                                        # [1, Lr]

        cm = cmask_ref[0]                                       # [PT, Lc] f32

        # Pre-normalized bf16 embeddings straight into the MXU: contract the
        # hidden dims of both operands (no transpose, f32 accumulation).
        c_n = cand_ref[0].reshape(pair_tile * lc, d)            # [PT*Lc, D] bf16
        r_n = ref_ref[0]                                        # [Lr, D]    bf16
        sim = lax.dot_general(
            c_n, r_n,
            dimension_numbers=(((1,), (1,)), ((), ())),
            preferred_element_type=jnp.float32)                 # [PT*Lc, Lr]
        sim3 = sim.reshape(pair_tile, lc, lr)                   # [PT, Lc, Lr]

        # Additive mask biases (no [PT,Lc,Lr] outer-product temporaries).
        # Both biases are applied before BOTH maxes so padded candidate tokens
        # cannot win the recall max and padded ref tokens cannot win precision.
        c_bias = (cm - 1.0)[:, :, None] * _NEG_BIAS             # [PT, Lc, 1]
        r_bias = ((rm - 1.0) * _NEG_BIAS)[None, :, :]           # [1, 1, Lr]
        sim_b = sim3 + c_bias + r_bias                          # [PT, Lc, Lr]

        # Greedy matching: precision = per-cand-token best ref match,
        # recall = per-ref-token best cand match (both per pair).
        word_prec = jnp.max(sim_b, axis=2)                      # [PT, Lc] (lane reduce)
        word_rec = jnp.max(sim_b, axis=1)                       # [PT, Lr] (sublane reduce)

        # -1e9 word values on padded positions are zeroed by the mask products.
        p_num = jnp.sum(word_prec * cm, axis=1, keepdims=True)  # [PT, 1]
        p_den = jnp.sum(cm, axis=1, keepdims=True)              # [PT, 1]
        r_num = jnp.sum(word_rec * rm, axis=1, keepdims=True)   # [PT, 1]
        r_den = jnp.sum(rm)                                     # scalar

        prec = p_num / jnp.maximum(p_den, 1.0)
        rec = r_num / jnp.maximum(r_den, 1.0)
        den = prec + rec
        safe_den = jnp.where(jnp.abs(den) > 1e-8, den, 1.0)
        f1 = jnp.where(jnp.abs(den) > 1e-8, 2.0 * prec * rec / safe_den, 0.0)
        # Pairs with an empty candidate or empty reference get 0 (not +-1e9).
        valid = (p_den > 0.0) & (r_den > 0.0)
        f1 = jnp.where(valid, f1, 0.0)                          # [PT, 1]

        # Lane-dense output row (last block dim == full array dim).
        out_ref[...] = jnp.transpose(f1).reshape(1, 1, pair_tile).astype(
            out_ref.dtype)

    return kernel


def _default_vmem_limit_bytes():
    # ~7/8 of physical VMEM: ≈56 MiB on v7x (64 MiB), ≈112 MiB on v5e/v6e.
    try:
        cap = int(pltpu.get_tpu_info().vmem_capacity_bytes)
    except Exception:
        cap = 128 * 1024 * 1024
    return cap * 7 // 8


def bertscore_f1(cand_emb, ref_emb, cand_mask, src_lens, *, pair_tile=64,
                 vmem_limit_bytes=None):
    """BERTScore F1 for every (candidate, shared-reference) pair.

    cand_emb:  [B, P, Lc, D]  candidate token embeddings (all P share ref b)
    ref_emb:   [B, Lr, D]     reference token embeddings
    cand_mask: [B, P, Lc]     candidate attention mask (1 = valid token)
    src_lens:  [B] int32      valid token count of each reference
    pair_tile: candidates per grid step; lower on v7x (VMEM 64 MiB), raise on
               v5e/v6e (128 MiB) — the bf16 candidate block is
               2*PT*Lc*D bytes per pipeline buffer.
    returns    [B, P] float32 F1 scores
    """
    B, P, Lc, D = cand_emb.shape
    Lr = ref_emb.shape[1]

    Dp = _round_up(D, 128)
    Lcp = _round_up(Lc, 16)          # bf16 sublane packing
    Lrp = _round_up(Lr, 128)         # lane dim of sim -> full lane utilization
    PT = _round_up(max(1, min(pair_tile, P)), 8)
    Pp = _round_up(P, PT)

    if vmem_limit_bytes is None:
        vmem_limit_bytes = _default_vmem_limit_bytes()

    # L2-normalize in f32 in the wrapper (hoisted out of the kernel), then pad
    # and cast to bf16 so only half-width data crosses HBM per step.
    c32 = cand_emb.astype(jnp.float32)
    r32 = ref_emb.astype(jnp.float32)
    c_n = c32 * lax.rsqrt(jnp.sum(c32 * c32, axis=-1, keepdims=True) + _EPS)
    r_n = r32 * lax.rsqrt(jnp.sum(r32 * r32, axis=-1, keepdims=True) + _EPS)

    c_n = jnp.pad(
        c_n, ((0, 0), (0, Pp - P), (0, Lcp - Lc), (0, Dp - D))
    ).astype(jnp.bfloat16)
    r_n = jnp.pad(
        r_n, ((0, 0), (0, Lrp - Lr), (0, Dp - D))
    ).astype(jnp.bfloat16)
    cand_mask = jnp.pad(
        cand_mask, ((0, 0), (0, Pp - P), (0, Lcp - Lc))
    ).astype(jnp.float32)
    src_lens = src_lens.astype(jnp.int32)

    n_pt = Pp // PT
    grid = (B, n_pt)
    kernel = _make_bertscore_kernel(PT, Lcp, Lrp, Dp)

    out = pl.pallas_call(
        kernel,
        out_shape=jax.ShapeDtypeStruct((B, n_pt, PT), jnp.float32),
        grid_spec=pltpu.PrefetchScalarGridSpec(
            num_scalar_prefetch=1,
            grid=grid,
            in_specs=[
                # candidate mask, lane-dense along Lc
                pl.BlockSpec((1, PT, Lcp), lambda b, pt, lens: (b, pt, 0)),
                # pre-normalized candidate embeddings: PT pairs per step
                pl.BlockSpec((1, PT, Lcp, Dp), lambda b, pt, lens: (b, pt, 0, 0)),
                # shared pre-normalized reference: indexed only by b
                pl.BlockSpec((1, Lrp, Dp), lambda b, pt, lens: (b, 0, 0)),
            ],
            out_specs=pl.BlockSpec((1, 1, PT), lambda b, pt, lens: (b, pt, 0)),
        ),
        compiler_params=pltpu.CompilerParams(
            # Every (b, pt) output tile is independent -> both axes parallel,
            # so v7x's two TensorCores are both used even at B == 1.
            dimension_semantics=("parallel", "parallel"),
            vmem_limit_bytes=int(vmem_limit_bytes),
        ),
    )(src_lens, cand_mask, c_n, r_n)
    return out.reshape(B, Pp)[:, :P]


class BertScoreModelPallas:
    """Mirrors BertScore_Model.forward but operates on token embeddings.

    TODO(synk): AutoTokenizer + pretrained `get_model(...)` transformer encoder
    have no Pallas equivalent; deterministic synthetic token embeddings stand in
    for the layer-9 BERT hidden states produced inside `score(...)`.
    """

    def __init__(self, hidden_dim=128):
        self.hidden_dim = hidden_dim

    def forward(self, permuted_emb, permuted_mask, source_emb, source_mask, batch_size):
        # permuted_emb: [P, B, Lc, D], permuted_mask: [P, B, 1, Lc]
        # source_emb:  [B, Lr, D],     source_mask:  [B, 1, Lr]
        P, B, Lc, D = permuted_emb.shape

        # Regroup so all P candidates of source b share one resident reference
        # block (no P-fold tiling of the source).
        cand = jnp.transpose(permuted_emb, (1, 0, 2, 3))                  # [B, P, Lc, D]
        cand_mask = jnp.transpose(permuted_mask[:, :, 0, :], (1, 0, 2))   # [B, P, Lc]
        # Attention masks are prefix-style (tokenizer output) -> lengths.
        src_lens = jnp.sum(source_mask[:, 0, :], axis=-1).astype(jnp.int32)  # [B]

        # score(...)[-1] -> F1 per (cand, ref) pair  (Pallas kernel hot path)
        scores_bp = bertscore_f1(cand, source_emb, cand_mask, src_lens)   # [B, P]

        # all_score order in PyTorch is [p*B + b]; then
        # all_score.view(-1, min(len(source), args.batch_size)).transpose(0, 1)
        m = min(B, batch_size)
        all_score = jnp.transpose(scores_bp).reshape(-1)                  # [P*B]
        batch_score = all_score.reshape(-1, m).T
        return batch_score


def _length_mask(lengths, L):
    idx = jnp.arange(L)[None, :]
    return (idx < jnp.asarray(lengths)[:, None]).astype(jnp.float32)


def _bertscore_f1_ref(cand_emb, ref_emb, cand_mask, src_lens):
    """Pure-JAX f32 reference of the same F1 math (for correctness checking)."""
    Lr = ref_emb.shape[1]
    c_n = cand_emb / jnp.sqrt(jnp.sum(cand_emb ** 2, -1, keepdims=True) + _EPS)
    r_n = ref_emb / jnp.sqrt(jnp.sum(ref_emb ** 2, -1, keepdims=True) + _EPS)
    sim = jnp.einsum('bpld,brd->bplr', c_n, r_n)
    rm = (jnp.arange(Lr)[None, :] < src_lens[:, None]).astype(jnp.float32)   # [B, Lr]
    pair_mask = cand_mask[:, :, :, None] * rm[:, None, None, :]
    sim_m = jnp.where(pair_mask > 0.5, sim, -1e9)
    word_prec = jnp.max(sim_m, axis=3)
    word_rec = jnp.max(sim_m, axis=2)
    p_num = jnp.sum(word_prec * cand_mask, axis=2)
    p_den = jnp.sum(cand_mask, axis=2)
    r_num = jnp.sum(word_rec * rm[:, None, :], axis=2)
    r_den = jnp.sum(rm, axis=1)[:, None]
    prec = p_num / jnp.maximum(p_den, 1.0)
    rec = r_num / jnp.maximum(r_den, 1.0)
    den = prec + rec
    safe_den = jnp.where(jnp.abs(den) > 1e-8, den, 1.0)
    f1 = jnp.where(jnp.abs(den) > 1e-8, 2.0 * prec * rec / safe_den, 0.0)
    return jnp.where((p_den > 0) & (r_den > 0), f1, 0.0)


if __name__ == "__main__":
    key = jax.random.PRNGKey(0)
    P, B, Lc, Lr, D = 4, 2, 8, 8, 128   # P permutation lists, batch of B sources
    batch_size = 8

    k1, k2 = jax.random.split(key)
    # Deterministic synthetic "layer-9 hidden state" embeddings.
    permuted_emb = jax.random.normal(k1, (P, B, Lc, D), dtype=jnp.float32)
    source_emb = jax.random.normal(k2, (B, Lr, D), dtype=jnp.float32)

    # Variable valid lengths (simulating padded tokenization).
    cand_lens = jnp.array([[8, 6], [7, 5], [8, 8], [4, 7]], dtype=jnp.int32)  # [P, B]
    src_lens = jnp.array([8, 7], dtype=jnp.int32)
    permuted_mask = _length_mask(cand_lens.reshape(-1), Lc).reshape(P, B, 1, Lc)
    source_mask = _length_mask(src_lens, Lr).reshape(B, 1, Lr)

    model = BertScoreModelPallas(hidden_dim=D)
    batch_score = model.forward(permuted_emb, permuted_mask, source_emb,
                                source_mask, batch_size)
    batch_score = jax.block_until_ready(batch_score)

    # Check against a pure-JAX f32 reference (bf16 matmul tolerance).
    cand_bpld = jnp.transpose(permuted_emb, (1, 0, 2, 3))
    cmask_bpl = jnp.transpose(permuted_mask[:, :, 0, :], (1, 0, 2))
    ref_scores = _bertscore_f1_ref(cand_bpld, source_emb, cmask_bpl, src_lens)  # [B, P]
    m = min(B, batch_size)
    expected = jnp.transpose(ref_scores).reshape(-1).reshape(-1, m).T

    assert batch_score.shape == (m, P)
    assert bool(jnp.all(jnp.isfinite(batch_score)))
    assert bool(jnp.allclose(batch_score, expected, atol=5e-2, rtol=0.0)), (
        float(jnp.max(jnp.abs(batch_score - expected))))
    print("KERNEL_OK")
</pallas_src>

<mosaic_0001>
module attributes {stable_mosaic.version = 11 : i64} {
  func.func @kernel(%arg0: i32, %arg1: i32, %arg2: memref<2xi32, #tpu.memory_space<smem>>, %arg3: memref<1x8x16xf32, #tpu.memory_space<vmem>>, %arg4: memref<1x8x16x128xbf16, #tpu.memory_space<vmem>>, %arg5: memref<1x128x128xbf16, #tpu.memory_space<vmem>>, %arg6: memref<1x1x8xf32, #tpu.memory_space<vmem>>) attributes {dimension_semantics = [#tpu.dimension_semantics<parallel>, #tpu.dimension_semantics<parallel>], iteration_bounds = array<i64: 2, 1>, scalar_prefetch = 1 : i64, scratch_operands = 0 : i64, tpu.core_type = #tpu.core_type<tc>, window_params = [{transform_indices = @transform_0, window_bounds = array<i64: 1, 8, 16>}, {transform_indices = @transform_1, window_bounds = array<i64: 1, 8, 16, 128>}, {transform_indices = @transform_2, window_bounds = array<i64: 1, 128, 128>}, {transform_indices = @transform_3, window_bounds = array<i64: 1, 1, 8>}]} {
    %0 = arith.index_cast %arg0 : i32 to index
    %1 = memref.load %arg2[%0] : memref<2xi32, #tpu.memory_space<smem>>
    %2 = tpu.iota {dimensions = array<i32: 1>} : vector<1x128xi32>
    %3 = vector.broadcast %1 : i32 to vector<1x128xi32>
    %4 = arith.cmpi slt, %2, %3 : vector<1x128xi32>
    %5 = arith.extui %4 : vector<1x128xi1> to vector<1x128xi32>
    %6 = arith.sitofp %5 : vector<1x128xi32> to vector<1x128xf32>
    %c0 = arith.constant 0 : index
    %c0_0 = arith.constant 0 : index
    %c0_1 = arith.constant 0 : index
    %7 = vector.load %arg3[%c0, %c0_0, %c0_1] : memref<1x8x16xf32, #tpu.memory_space<vmem>>, vector<1x8x16xf32>
    %8 = vector.shape_cast %7 : vector<1x8x16xf32> to vector<8x16xf32>
    %c0_2 = arith.constant 0 : index
    %c0_3 = arith.constant 0 : index
    %c0_4 = arith.constant 0 : index
    %c0_5 = arith.constant 0 : index
    %9 = vector.load %arg4[%c0_2, %c0_3, %c0_4, %c0_5] : memref<1x8x16x128xbf16, #tpu.memory_space<vmem>>, vector<1x8x16x128xbf16>
    %10 = vector.shape_cast %9 : vector<1x8x16x128xbf16> to vector<8x16x128xbf16>
    %11 = vector.shape_cast %10 : vector<8x16x128xbf16> to vector<128x128xbf16>
    %c0_6 = arith.constant 0 : index
    %c0_7 = arith.constant 0 : index
    %c0_8 = arith.constant 0 : index
    %12 = vector.load %arg5[%c0_6, %c0_7, %c0_8] : memref<1x128x128xbf16, #tpu.memory_space<vmem>>, vector<1x128x128xbf16>
    %13 = vector.shape_cast %12 : vector<1x128x128xbf16> to vector<128x128xbf16>
    %cst = arith.constant dense<0.000000e+00> : vector<128x128xf32>
    %14 = tpu.matmul %11, %13, %cst {dimension_numbers = #tpu.dot_dimension_numbers<[1], [1], [0], [0], [0, 0, 1, 0], [], []>} : vector<128x128xbf16>, vector<128x128xbf16>, vector<128x128xf32> -> vector<128x128xf32>
    %15 = vector.shape_cast %14 : vector<128x128xf32> to vector<8x16x128xf32>
    %cst_9 = arith.constant 1.000000e+00 : f32
    %16 = vector.broadcast %cst_9 : f32 to vector<8x16xf32>
    %17 = arith.subf %8, %16 : vector<8x16xf32>
    %18 = vector.shape_cast %17 : vector<8x16xf32> to vector<8x16x1xf32>
    %cst_10 = arith.constant 1.000000e+09 : f32
    %19 = vector.broadcast %cst_10 : f32 to vector<8x16x1xf32>
    %20 = arith.mulf %18, %19 : vector<8x16x1xf32>
    %cst_11 = arith.constant 1.000000e+00 : f32
    %21 = vector.broadcast %cst_11 : f32 to vector<1x128xf32>
    %22 = arith.subf %6, %21 : vector<1x128xf32>
    %cst_12 = arith.constant 1.000000e+09 : f32
    %23 = vector.broadcast %cst_12 : f32 to vector<1x128xf32>
    %24 = arith.mulf %22, %23 : vector<1x128xf32>
    %25 = vector.shape_cast %24 : vector<1x128xf32> to vector<1x1x128xf32>
    %26 = vector.broadcast %20 : vector<8x16x1xf32> to vector<8x16x128xf32>
    %27 = arith.addf %15, %26 : vector<8x16x128xf32>
    %28 = vector.broadcast %25 : vector<1x1x128xf32> to vector<8x16x128xf32>
    %29 = arith.addf %27, %28 : vector<8x16x128xf32>
    %cst_13 = arith.constant dense<0xFF800000> : vector<8x16xf32>
    %30 = vector.multi_reduction <maximumf>, %29, %cst_13 [2] : vector<8x16x128xf32> to vector<8x16xf32>
    %cst_14 = arith.constant dense<0xFF800000> : vector<8x128xf32>
    %31 = vector.multi_reduction <maximumf>, %29, %cst_14 [1] : vector<8x16x128xf32> to vector<8x128xf32>
    %32 = arith.mulf %30, %8 : vector<8x16xf32>
    %cst_15 = arith.constant dense<0.000000e+00> : vector<8xf32>
    %33 = vector.multi_reduction <add>, %32, %cst_15 [1] : vector<8x16xf32> to vector<8xf32>
    %34 = vector.shape_cast %33 : vector<8xf32> to vector<8x1xf32>
    %cst_16 = arith.constant dense<0.000000e+00> : vector<8xf32>
    %35 = vector.multi_reduction <add>, %8, %cst_16 [1] : vector<8x16xf32> to vector<8xf32>
    %36 = vector.shape_cast %35 : vector<8xf32> to vector<8x1xf32>
    %37 = vector.broadcast %6 : vector<1x128xf32> to vector<8x128xf32>
    %38 = arith.mulf %31, %37 : vector<8x128xf32>
    %cst_17 = arith.constant dense<0.000000e+00> : vector<8xf32>
    %39 = vector.multi_reduction <add>, %38, %cst_17 [1] : vector<8x128xf32> to vector<8xf32>
    %40 = vector.shape_cast %39 : vector<8xf32> to vector<8x1xf32>
    %41 = vector.shape_cast %6 : vector<1x128xf32> to vector<1x1x128xf32>
    %cst_18 = arith.constant dense<0.000000e+00> : vector<1xf32>
    %42 = vector.multi_reduction <add>, %41, %cst_18 [1, 2] : vector<1x1x128xf32> to vector<1xf32>
    %43 = vector.shape_cast %42 : vector<1xf32> to vector<1x1x1xf32>
    %44 = vector.extract %43[0, 0, 0] : f32 from vector<1x1x1xf32>
    %cst_19 = arith.constant 1.000000e+00 : f32
    %45 = vector.broadcast %cst_19 : f32 to vector<8x1xf32>
    %46 = arith.maximumf %36, %45 : vector<8x1xf32>
    %47 = arith.divf %34, %46 : vector<8x1xf32>
    %cst_20 = arith.constant 1.000000e+00 : f32
    %48 = arith.maximumf %44, %cst_20 : f32
    %49 = vector.broadcast %48 : f32 to vector<8x1xf32>
    %50 = arith.divf %40, %49 : vector<8x1xf32>
    %51 = arith.addf %47, %50 : vector<8x1xf32>
    %52 = math.absf %51 : vector<8x1xf32>
    %cst_21 = arith.constant 9.99999993E-9 : f32
    %53 = vector.broadcast %cst_21 : f32 to vector<8x1xf32>
    %54 = arith.cmpf ogt, %52, %53 : vector<8x1xf32>
    %cst_22 = arith.constant 1.000000e+00 : f32
    %55 = vector.broadcast %cst_22 : f32 to vector<8x1xf32>
    %56 = arith.select %54, %51, %55 : vector<8x1xi1>, vector<8x1xf32>
    %57 = math.absf %51 : vector<8x1xf32>
    %cst_23 = arith.constant 9.99999993E-9 : f32
    %58 = vector.broadcast %cst_23 : f32 to vector<8x1xf32>
    %59 = arith.cmpf ogt, %57, %58 : vector<8x1xf32>
    %cst_24 = arith.constant 2.000000e+00 : f32
    %60 = vector.broadcast %cst_24 : f32 to vector<8x1xf32>
    %61 = arith.mulf %60, %47 : vector<8x1xf32>
    %62 = arith.mulf %61, %50 : vector<8x1xf32>
    %63 = arith.divf %62, %56 : vector<8x1xf32>
    %cst_25 = arith.constant 0.000000e+00 : f32
    %64 = vector.broadcast %cst_25 : f32 to vector<8x1xf32>
    %65 = arith.select %59, %63, %64 : vector<8x1xi1>, vector<8x1xf32>
    %cst_26 = arith.constant 0.000000e+00 : f32
    %66 = vector.broadcast %cst_26 : f32 to vector<8x1xf32>
    %67 = arith.cmpf ogt, %36, %66 : vector<8x1xf32>
    %cst_27 = arith.constant 0.000000e+00 : f32
    %68 = arith.cmpf ogt, %44, %cst_27 : f32
    %69 = vector.broadcast %68 : i1 to vector<8x1xi1>
    %70 = arith.andi %67, %69 : vector<8x1xi1>
    %cst_28 = arith.constant 0.000000e+00 : f32
    %71 = vector.broadcast %cst_28 : f32 to vector<8x1xf32>
    %72 = arith.select %70, %65, %71 : vector<8x1xi1>, vector<8x1xf32>
    %73 = tpu.transpose %72, [1, 0] : vector<8x1xf32> -> vector<1x8xf32>
    %74 = vector.shape_cast %73 : vector<1x8xf32> to vector<1x1x8xf32>
    %c0_29 = arith.constant 0 : index
    %c0_30 = arith.constant 0 : index
    %c0_31 = arith.constant 0 : index
    %75 = vector.load %arg6[%c0_29, %c0_30, %c0_31] : memref<1x1x8xf32, #tpu.memory_space<vmem>>, vector<1x1x8xf32>
    tpu.vector_store %arg6[%c0_29, %c0_30, %c0_31], %74 {strides = array<i32>} : memref<1x1x8xf32, #tpu.memory_space<vmem>>, vector<1x1x8xf32>,
    return
  }
  func.func @transform_0(%arg0: i32, %arg1: i32, %arg2: memref<2xi32, #tpu.memory_space<smem>>) -> (i32, i32, i32) {
    %c0_i32 = arith.constant 0 : i32
    %c0_i32_0 = arith.constant 0 : i32
    return %arg0, %arg1, %c0_i32 : i32, i32, i32
  }
  func.func @transform_1(%arg0: i32, %arg1: i32, %arg2: memref<2xi32, #tpu.memory_space<smem>>) -> (i32, i32, i32, i32) {
    %c0_i32 = arith.constant 0 : i32
    %c0_i32_0 = arith.constant 0 : i32
    %c0_i32_1 = arith.constant 0 : i32
    return %arg0, %arg1, %c0_i32, %c0_i32_0 : i32, i32, i32, i32
  }
  func.func @transform_2(%arg0: i32, %arg1: i32, %arg2: memref<2xi32, #tpu.memory_space<smem>>) -> (i32, i32, i32) {
    %c0_i32 = arith.constant 0 : i32
    %c0_i32_0 = arith.constant 0 : i32
    %c0_i32_1 = arith.constant 0 : i32
    return %arg0, %c0_i32, %c0_i32_0 : i32, i32, i32
  }
  func.func @transform_3(%arg0: i32, %arg1: i32, %arg2: memref<2xi32, #tpu.memory_space<smem>>) -> (i32, i32, i32) {
    %c0_i32 = arith.constant 0 : i32
    %c0_i32_0 = arith.constant 0 : i32
    return %arg0, %arg1, %c0_i32 : i32, i32, i32
  }
}

</mosaic_0001>

<bundles_post_ra>
// kernel: tpu_custom_call.1
= control target key start
LH: loop header
LB: loop body
LE: loop exit
PB: predicated region body
PF: predicated region fallthrough
CT: control target
= control target key end

     0   :  { %s2099_s0 = inlined_call_operand.hbm [shape: s32[2], index: 0, kind: input, shape index: {}]   ;;  %s2100_s1 = inlined_call_operand.hbm [shape: f32[2,8,16], index: 1, kind: input, shape index: {}]   ;;  %s2101_s2 = inlined_call_operand.hbm [shape: bf16[2,8,16,128], index: 2, kind: input, shape index: {}]   ;;  %s2102_s3 = inlined_call_operand.hbm [shape: bf16[2,128,128], index: 3, kind: input, shape index: {}]   ;;  %s2103_s4 = inlined_call_operand.hbm [shape: f32[2,1,8], index: 4, kind: output, shape index: {}]  }
   0x1   :  { %2111 = sst [smem:[#allocation18_spill]] %s2101_s2  ;;  %s1477_s17 = scalar_lea.hbm %s2099_s0, 16 }
   0x2   :  { %p1478_p0 = scmp.ne.s32.totalorder %s2099_s0, %s1477_s17  ;;  %p1481_p1 = scmp.lt.u32.totalorder %s1477_s17, %s2099_s0 }
   0x4   :  { %p1483_p2 = pnand %p1481_p1, %p1478_p0 }
   0x6   :  { %1486 = shalt.err (!%p1483_p2)  }
   0x7   :  { %s1667_s22 = smov [#allocation3]  }
   0x8   :  { %10 = dma.hbm_to_smem %s2099_s0, 16, %s1667_s22, [#allocation2] }
   0x9   :  { %1629 = dma.done.wait [#allocation2], 16 }
   0xa   :  { %1630 = vsyncadd [#allocation2], 4294967280 }
   0xb   :  { %12 = sfence }
   0xc   :  { %13 = vsyncpa [#allocation5], 0 }
   0xd   :  { %15 = vsyncpa [#allocation5 + $0x1], 0 }
   0xe   :  { %16 = vsyncpa [#allocation8], 0 }
   0xf   :  { %18 = vsyncpa [#allocation8 + $0x1], 0 }
  0x10   :  { %19 = vsyncpa [#allocation6], 0 }
  0x11   :  { %21 = vsyncpa [#allocation6 + $0x1], 0  ;;  %s1714_s25 = smov 0   ;;  %s1716_s26 = smov 0  }
  0x12   :  { %s1718_s27 = smov 0   ;;  %s1720_s28 = smov 0  }
  0x13   :  { %s1722_s29 = smov 0   ;;  %s1724_s0 = smov 0  }
  0x14 LB: > { %2112 = sst [smem:[#allocation15_spill]] %s1653_s27  ;;  %s1745_s30 = sadd.s32 4294967295, %s1665_s0   ;;  %s1665_s0 = sphi %s1724_s0, %s27_s0   ;;  %s1661_s29 = sphi %s1722_s29, %s2136_s29   ;;  %s1657_s28 = sphi %s1720_s28, %s2135_s28   ;;  %s1653_s27 = sphi %s1718_s27, %s2131_s27   ;;  %s1649_s26 = sphi %s1716_s26, %s2134_s26   ;;  %s1645_s25 = sphi %s1714_s25, %s2133_s25  }
  0x15   : > { %s1270_s5 = sadd.s32 4294967294, %s1665_s0   ;;  %s39_s6 = sadd.s32 1, %s1661_s29 }
  0x16   : > { %s48_s7 = sadd.s32 1, %s1653_s27  ;;  %p41_p3 = scmp.ge.s32.totalorder %s39_s6, 2 }
  0x17   : > { %p55_p4 = scmp.ne.s32.totalorder %s1653_s27, %s1649_s26  ;;  %p56_p5 = scmp.eq.s32.totalorder %s1665_s0, 0 }
  0x18   : > { %p61_p6 = scmp.ne.s32.totalorder %s1649_s26, %s1645_s25  ;;  %s2138_s6 = smov (%p41_p3, %s39_s6), 0 }
  0x19   : > { %2113 = sst [smem:[#allocation16_spill]] %s2138_s6  ;;  %p1757_p7 = por %p56_p5, %p55_p4 }
  0x1a   : > { %p62_p8 = scmp.eq.s32.totalorder %s1745_s30, 0  ;;  %s43_s9 = ssub.s32 %s1661_s29, %s2138_s6 }
  0x1b   : > { %p141_p9 = scmp.eq.s32.totalorder %s1745_s30, 1  ;;  %p46_p10 = scmp.eq.s32.totalorder %s43_s9, 0 }
  0x1c   : > { %p1765_p11 = por %p62_p8, %p61_p6  ;;  %p147_p13 = scmp.eq.s32.totalorder %s1270_s5, 1 }
  0x1d   : > { %p1769_p12 = por %p141_p9, %p55_p4  ;;  %p1397_p2 = scmp.lt.s32.totalorder %s1665_s0, 2 }
  0x1e   : > { %s2115_s10 = scalar_select %p1765_p11, 1, 0 }
  0x1f   : > { %s2116_s11 = scalar_select %p1769_p12, 1, 0 }
  0x20   : > { %s1774_s12 = scalar_select %p46_p10, %s1653_s27, %s48_s7  }
  0x21   : > { %p1776_p0 = por %p147_p13, %p61_p6  ;;  %s1783_s14 = sand.u32 1, %s1653_s27  }
  0x22   : > { %2117 = sst [smem:[#allocation17_spill]] %s1774_s12  ;;  %s186_s15 = sand.u32 1, %s1665_s0  }
  0x23   : > { %s2118_s13 = scalar_select %p1776_p0, 1, 0 }
  0x24   : > { %s1275_s16 = sshll.u32 %s1783_s14, 6  ;;  %p1789_p3 = pnand %p1397_p2, %p1757_p7 }
  0x25   : > { %s1307_s18 = sshll.u32 %s1661_s29, 10  ;;  %s2120_s2 = sld [smem:[#allocation18_spill]] }
  0x26   : > { %s2119_s17 = scalar_select %p1789_p3, 1, 0 }
  0x27   : > { %s190_s22 = scalar_lea.vmem [#allocation7], %s1275_s16  ;;  %s1805_s24 = scalar_lea.sflag [#allocation8], %s186_s15 }
  0x28   : > { %s200_s23 = sshll.u32 %s190_s22, 4  ;;  %p1811_p5 = pneg %p1789_p3  ;;  %s1803_s23 = int_to_ptr.vmem [resolvable:$true] %s200_s23 }
  0x2b   : > { %s1799_s21 = scalar_lea.hbm %s2120_s2, %s1307_s18  ;;  %s1492_s19 = scalar_lea.hbm %s2120_s2, 2048 }
  0x2c   : > { %s1487_s5 = scalar_lea.hbm %s1799_s21, 1024  ;;  %p1493_p8 = scmp.lt.u32.totalorder %s1799_s21, %s2120_s2 }
  0x2d   : > { %p1488_p4 = scmp.ne.s32.totalorder %s1799_s21, %s1487_s5  ;;  %p1494_p9 = scmp.lt.u32.totalorder %s1492_s19, %s1487_s5 }
  0x2e   : > { %p1496_p13 = scmp.lt.u32.totalorder %s1487_s5, %s1799_s21 }
  0x2f   : > { %p1490_p6 = pnand %p1811_p5, %p1488_p4  ;;  %p1495_p10 = por %p1494_p9, %p1493_p8 }
  0x31   : > { %p1491_p7 = pneg %p1490_p6  ;;  %p1497_p2 = por %p1496_p13, %p1495_p10 }
  0x33   : > { %p1498_p1 = pnand %p1497_p2, %p1491_p7 }
  0x35   : > { %1501 = shalt.err (!%p1498_p1)
}
  0x36   : > { %s1502_s15 = scalar_lea.vmem %s1803_s23, 1024  ;;  %s1668_s8 = smov [#allocation7]  }
  0x37   : > { %p1503_p4 = scmp.ne.s32.totalorder %s1803_s23, %s1502_s15  ;;  %s1507_s9 = sshll.u32 %s1668_s8, 4  ;;  %s1508_s9 = int_to_ptr.vmem [resolvable:$false] %s1507_s9 }
  0x38   : > { %s1509_s20 = scalar_lea.vmem %s1508_s9, 2048  ;;  %p1510_p12 = scmp.lt.s32.totalorder %s1803_s23, %s1508_s9 }
  0x39   : > { %p1505_p6 = pnand %p1503_p4, %p1811_p5  ;;  %p1511_p11 = scmp.lt.s32.totalorder %s1509_s20, %s1502_s15 }
  0x3b   : > { %p1506_p0 = pneg %p1505_p6  ;;  %p1512_p8 = por %p1511_p11, %p1510_p12 }
  0x3d   : > { %p1513_p9 = pnand %p1512_p8, %p1506_p0 }
  0x3f   : > { %1516 = shalt.err (!%p1513_p9)
}
  0x40   : > { %s2108_s5 = smov 64   ;;  %s1670_s19 = smov 4  }
  0x41   : > { %1389 = dma.hbm_to_vmem [thread:$0]  (!%p1789_p3), %s1799_s21, 1024, %s1803_s23, %s1805_s24, %s2108_s5, %s2108_s5, %s1670_s19  }
  0x42   : > { %s1843_s8 = scalar_lea.hbm %s2102_s3, %s1307_s18  ;;  %p1281_p11 = scmp.ge.s32.totalorder %s1665_s0, 1 }
  0x43   : > { %s214_s9 = scalar_lea.vmem [#allocation9], %s1275_s16  ;;  %p229_p12 = scmp.lt.s32.totalorder %s1665_s0, 3 }
  0x44   : > { %s221_s20 = sshll.u32 %s214_s9, 4  ;;  %s1273_s6 = sshll.u32 %s1783_s14, 3  ;;  %s1860_s20 = int_to_ptr.vmem [resolvable:$true] %s221_s20 }
  0x45   : > { %p1849_p0 = pnand %p1281_p11, %p229_p12  ;;  %s1274_s12 = sshll.u32 %s1661_s29, 7 }
  0x46   : > { %s1858_s23 = scalar_lea.hbm %s2100_s1, %s1274_s12  ;;  %s171_s16 = scalar_lea.vmem [#allocation4], %s1273_s6 }
  0x47   : > { %s2122_s2 = scalar_select %p1849_p0, 1, 0 }
  0x48   : > { %s179_s18 = sshll.u32 %s171_s16, 4  ;;  %s168_s22 = scalar_lea.sflag [#allocation5], %s1783_s14  ;;  %s180_s18 = int_to_ptr.vmem [resolvable:$true] %s179_s18 }
  0x49   : > { %s1517_s15 = scalar_lea.hbm %s1858_s23, 128  ;;  %s1522_s27 = scalar_lea.hbm %s2100_s1, 256 }
  0x4a   : > { %p1518_p1 = scmp.ne.s32.totalorder %s1858_s23, %s1517_s15  ;;  %p1523_p13 = scmp.lt.u32.totalorder %s1858_s23, %s2100_s1 }
  0x4b   : > { %p1524_p2 = scmp.lt.u32.totalorder %s1522_s27, %s1517_s15  ;;  %p1526_p6 = scmp.lt.u32.totalorder %s1517_s15, %s1858_s23 }
  0x4c   : > { %p1520_p7 = pnand %p1518_p1, %p1811_p5 }
  0x4d   : > { %p1525_p4 = por %p1524_p2, %p1523_p13 }
  0x4e   : > { %p1521_p10 = pneg %p1520_p7 }
  0x4f   : > { %p1527_p8 = por %p1526_p6, %p1525_p4 }
  0x51   : > { %p1528_p9 = pnand %p1527_p8, %p1521_p10 }
  0x53   : > { %1531 = shalt.err (!%p1528_p9)
}
  0x54   : > { %s1532_s6 = scalar_lea.vmem %s180_s18, 128  ;;  %s1671_s14 = smov [#allocation4]  }
  0x55   : > { %p1533_p11 = scmp.ne.s32.totalorder %s180_s18, %s1532_s6  ;;  %s1537_s16 = sshll.u32 %s1671_s14, 4  ;;  %s1538_s16 = int_to_ptr.vmem [resolvable:$false] %s1537_s16 }
  0x56   : > { %s1539_s5 = scalar_lea.vmem %s1538_s16, 256  ;;  %p1540_p7 = scmp.lt.s32.totalorder %s180_s18, %s1538_s16 }
  0x57   : > { %p1535_p12 = pnand %p1533_p11, %p1811_p5  ;;  %p1541_p0 = scmp.lt.s32.totalorder %s1539_s5, %s1532_s6 }
  0x59   : > { %p1536_p1 = pneg %p1535_p12  ;;  %p1542_p3 = por %p1541_p0, %p1540_p7 }
  0x5b   : > { %p1543_p2 = pnand %p1542_p3, %p1536_p1 }
  0x5d   : > { %1546 = shalt.err (!%p1543_p2)
}
  0x5e   : > { %p2123_p13 = scmp.ne.s32.totalorder %s2119_s17, 0  ;;  %s1547_s15 = scalar_lea.hbm %s1843_s8, 1024 }
  0x5f   : > { %p1548_p10 = scmp.ne.s32.totalorder %s1843_s8, %s1547_s15  ;;  %s1552_s12 = scalar_lea.hbm %s2102_s3, 2048 }
  0x60   : > { %1386 = dma.hbm_to_vmem [thread:$0]  (!%p2123_p13), %s1858_s23, 128, %s180_s18, %s168_s22  }
  0x61   : > { %p1550_p4 = pnand %p1548_p10, %p1811_p5  ;;  %p1553_p3 = scmp.lt.u32.totalorder %s1843_s8, %s2102_s3 }
  0x62   : > { %p1554_p0 = scmp.lt.u32.totalorder %s1552_s12, %s1547_s15  ;;  %p1556_p9 = scmp.lt.u32.totalorder %s1547_s15, %s1843_s8 }
  0x63   : > { %p1551_p6 = pneg %p1550_p4 }
  0x64   : > { %p1555_p8 = por %p1554_p0, %p1553_p3 }
  0x66   : > { %p1557_p11 = por %p1556_p9, %p1555_p8 }
  0x68   : > { %p1558_p12 = pnand %p1557_p11, %p1551_p6 }
  0x6a   : > { %1561 = shalt.err (!%p1558_p12)
}
  0x6b   : > { %s1562_s23 = scalar_lea.vmem %s1860_s20, 1024  ;;  %s1672_s18 = smov [#allocation9]  }
  0x6c   : > { %p1563_p1 = scmp.ne.s32.totalorder %s1860_s20, %s1562_s23  ;;  %s1567_s22 = sshll.u32 %s1672_s18, 4  ;;  %s1568_s22 = int_to_ptr.vmem [resolvable:$false] %s1567_s22 }
  0x6d   : > { %s1569_s14 = scalar_lea.vmem %s1568_s22, 2048  ;;  %p1570_p10 = scmp.lt.s32.totalorder %s1860_s20, %s1568_s22 }
  0x6e   : > { %p1565_p7 = pnand %p1563_p1, %p1811_p5  ;;  %p1571_p4 = scmp.lt.s32.totalorder %s1569_s14, %s1562_s23 }
  0x70   : > { %p1566_p2 = pneg %p1565_p7  ;;  %p1572_p3 = por %p1571_p4, %p1570_p10 }
  0x72   : > { %p1573_p0 = pnand %p1572_p3, %p1566_p2 }
  0x74   : > { %1576 = shalt.err (!%p1573_p0)
}
  0x75   : > { %s2124_s16 = smov 64   ;;  %p2125_p5 = scmp.ne.s32.totalorder %s2122_s2, 0 }
  0x76   : > { %1392 = dma.hbm_to_vmem [thread:$0]  (!%p2123_p13), %s1843_s8, 1024, %s1860_s20, %s1805_s24, %s2124_s16, %s2124_s16, %s1670_s19  }
  0x77   : > { %233 = sbr.rel (%p2125_p5) target bundleno = 1071 (0x42f), region = 32  ;;  %s1908_s7 = sand.u32 (!%p2125_p5), 1, %s1649_s26  }
  0x78   : > { %s1282_s5 = sshll.u32 (!%p2125_p5), %s1908_s7, 3  ;;  %s236_s15 = scalar_lea.sflag (!%p2125_p5), [#allocation5], %s1908_s7 }
  0x79   : > { %s1912_s9 = scalar_lea.vmem (!%p2125_p5), [#allocation4], %s1282_s5  ;;  %p2126_p6 = scmp.ne.s32.totalorder (!%p2125_p5), %s2115_s10, 0 }
  0x7e   : > { %1632 = dma.done.wait (%p2126_p6), %s236_s15, 128  }
  0x7f   : > { %1634 = vsyncadd (%p2126_p6), %s236_s15, 4294967168  ;;  %s244_s2 = sand.u32 1, %s1745_s30   ;;  %s1283_s17 = sshll.u32 %s1908_s7, 6 }
  0x80   : > { %s245_s24 = scalar_lea.sflag [#allocation8], %s244_s2  ;;  %s1920_s19 = scalar_lea.vmem [#allocation7], %s1283_s17 }
  0x81   : > { %1636 = dma.done.wait (%p2126_p6), %s245_s24, 2048  }
  0x82   : > { %1638 = vsyncadd (%p2126_p6), %s245_s24, 4294965248  ;;  %s1926_s8 = scalar_lea.vmem [#allocation9], %s1283_s17  ;;  %v292_v3 = vlaneseq  ;;  %v1463_v4 = vld [vmem:[%s1920_s19] sm:$0xff]   ;;  %v1940_v10 = vld [vmem:[%s1912_s9] sm:$0xff]  ;;  %s291_s30 = sld [smem:[#allocation3 + %s1657_s28]]  ;;  %v1673_v57 = vmov 0.0  }
  0x83   : > { %v1455_v0 = vld [vmem:[%s1926_s8] sm:$0xff]   ;;  %v1456_v1 = vld [vmem:[%s1926_s8 + $0x8] sm:$0xff]   ;;  %v1457_v2 = vld [vmem:[%s1926_s8 + $0x10] sm:$0xff]   ;;  %1341 = vmatprep.mubr.bf16.mxu0 %v1463_v4  ;;  %v1302_v11 = vadd.f32 -1.0, %v1940_v10  ;;  %vm1010_vm1 = vcmask 1041409   ;;  %vm1012_vm2 = vcmask 1042434  }
  0x84   : > { %1325 = vmatprep.subr.bf16.mxu0 %v1455_v0  ;;  %1357 = vmatprep.subr.bf16.mxu1 %v1455_v0  ;;  %v1464_v5 = vld [vmem:[%s1920_s19 + $0x20] sm:$0xff]   ;;  %v1934_v6 = vshrl.u32 %v292_v3, 7  ;;  %v1458_v9 = vld [vmem:[%s1926_s8 + $0x18] sm:$0xff]   ;;  %v1460_v20 = vld [vmem:[%s1926_s8 + $0x28] sm:$0xff]   ;;  %v1971_v53 = vand.u32 127, %v292_v3  ;;  %vm1014_vm3 = vcmask 1043459  }
  0x85   : > { %1326 = vmatpush3.bf16.xpose.msra.mxu0 %v1455_v0  ;;  %1365 = vmatpush3.bf16.xpose.msra.mxu1 %v1455_v0  ;;  %v1459_v15 = vld [vmem:[%s1926_s8 + $0x20] sm:$0xff]   ;;  %v1461_v25 = vld [vmem:[%s1926_s8 + $0x30] sm:$0xff]   ;;  %v1462_v29 = vld [vmem:[%s1926_s8 + $0x38] sm:$0xff]   ;;  %vm1016_vm4 = vcmask 1044484   ;;  %vm1018_vm5 = vcmask 1045509   ;;  %vm1020_vm6 = vcmask 1046534  }
  0x86   : > { %1327 = vmatprep.subr.bf16.mxu0 %v1456_v1  ;;  %1358 = vmatprep.subr.bf16.mxu1 %v1456_v1  ;;  %v527_v7 = vsub.s32 0, %v1934_v6  ;;  %v538_v8 = vsub.s32 1, %v1934_v6  ;;  %v549_v14 = vsub.s32 2, %v1934_v6  ;;  %v560_v17 = vsub.s32 3, %v1934_v6  ;;  %v1465_v34 = vld [vmem:[%s1920_s19 + $0x8] sm:$0xff]   ;;  %v1467_v36 = vld [vmem:[%s1920_s19 + $0x10] sm:$0xff]  }
  0x87   : > { %1349 = vmatprep.mubr.bf16.mxu1 %v1464_v5  ;;  %v571_v19 = vsub.s32 4, %v1934_v6  ;;  %v582_v22 = vsub.s32 5, %v1934_v6  ;;  %v593_v24 = vsub.s32 6, %v1934_v6  ;;  %v604_v27 = vsub.s32 7, %v1934_v6  ;;  %v1466_v35 = vld [vmem:[%s1920_s19 + $0x28] sm:$0xff]   ;;  %v1468_v37 = vld [vmem:[%s1920_s19 + $0x30] sm:$0xff]  }
  0x88   : > { %v528_v12 = vrot.slane %v1302_v11, %v527_v7  ;;  %v539_v13 = vrot.slane %v1302_v11, %v538_v8  ;;  %v550_v16 = vrot.slane %v1302_v11, %v549_v14  ;;  %v561_v18 = vrot.slane %v1302_v11, %v560_v17  ;;  %v1469_v40 = vld [vmem:[%s1920_s19 + $0x18] sm:$0xff]   ;;  %s1675_s20 = smov 1.0   ;;  %s1304_s21 = sshll.u32 %s1657_s28, 4 }
  0x89   : > { %v572_v21 = vrot.slane %v1302_v11, %v571_v19  ;;  %v583_v23 = vrot.slane %v1302_v11, %v582_v22  ;;  %v594_v26 = vrot.slane %v1302_v11, %v593_v24  ;;  %v605_v28 = vrot.slane %v1302_v11, %v604_v27  ;;  %v1470_v41 = vld [vmem:[%s1920_s19 + $0x38] sm:$0xff]   ;;  %s288_s6 = scalar_lea.vmem [#allocation10], %s1908_s7  ;;  %s2050_s14 = scalar_lea.hbm %s2103_s4, %s1304_s21 }
  0x8a   : > { %530 = vbcast.lane.b32.xlu0 %v528_v12, 256  ;;  %541 = vbcast.lane.b32.xlu1 %v539_v13, 256  ;;  %v755_v30 = vrot.slane %v1940_v10, %v527_v7  ;;  %v766_v31 = vrot.slane %v1940_v10, %v538_v8  ;;  %v777_v32 = vrot.slane %v1940_v10, %v549_v14  ;;  %v294_v54 = vstv %s291_s30  ;;  %s1147_s23 = sshll.u32 %s288_s6, 4  ;;  %s1134_s16 = scalar_lea.sflag [#allocation6], %s1908_s7  ;;  %s2052_s23 = int_to_ptr.vmem [resolvable:$true] %s1147_s23 }
  0x8b   : > { %v788_v33 = vrot.slane %v1940_v10, %v560_v17  ;;  %v799_v38 = vrot.slane %v1940_v10, %v571_v19  ;;  %v810_v39 = vrot.slane %v1940_v10, %v582_v22  ;;  %v821_v42 = vrot.slane %v1940_v10, %v593_v24  ;;  %s1577_s5 = scalar_lea.vmem %s2052_s23, 16  ;;  %p2127_p9 = scmp.ne.s32.totalorder %s2116_s11, 0 }
  0x8c   : > { %v832_v43 = vrot.slane %v1940_v10, %v604_v27  ;;  %vm295_vm0 = vcmp.lt.s32.totalorder %v1971_v53, %v294_v54  ;;  %vm1022_vm7 = vcmask 1047559   ;;  %vm1065_vm8 = vcmask 1040384   ;;  %p1578_p8 = scmp.ne.s32.totalorder %s2052_s23, %s1577_s5  ;;  %s1676_s28 = smov [#allocation10]  }
  0x8d   : > { %1328 = vmatpush3.bf16.xpose.msra.mxu0 %v1456_v1  ;;  %1366 = vmatpush3.bf16.xpose.msra.mxu1 %v1456_v1  ;;  %v1974_v58 = vsel %vm295_vm0, 1.0, %v1673_v57  ;;  %vm1025_vm9 = vcmask 130048   ;;  %vm945_vm10 = vcmask 130112   ;;  %vm1131_vm15 = vcmask 57344   ;;  %s1581_s15 = sshll.u32 %s1676_s28, 4  ;;  %s1582_s15 = int_to_ptr.vmem [resolvable:$false] %s1581_s15 }
  0x8e   : > { %1329 = vmatprep.subr.bf16.mxu0 %v1457_v2  ;;  %1359 = vmatprep.subr.bf16.mxu1 %v1457_v2  ;;  %v1303_v61 = vadd.f32 -1.0, %v1974_v58  ;;  %p1579_p11 = pnand %p1578_p8, %p2127_p9  ;;  %s1583_s9 = scalar_lea.vmem %s1582_s15, 32 }
  0x8f   : > { %534 = vbcast.lane.b32.xlu0 %v528_v12, 264  ;;  %545 = vbcast.lane.b32.xlu1 %v539_v13, 264  ;;  %p1584_p1 = scmp.lt.s32.totalorder %s2052_s23, %s1582_s15  ;;  %p1585_p7 = scmp.lt.s32.totalorder %s1583_s9, %s1577_s5 }
  0x90   : > { %v1977_v0 = vmul.f32 1e+09, %v1303_v61  ;;  %p1580_p12 = pneg %p1579_p11 }
  0x91   : > { %p1586_p2 = por %p1585_p7, %p1584_p1 }
  0x93   : > { %552 = vbcast.lane.b32.xlu0 %v550_v16, 256  ;;  %556 = vbcast.lane.b32.xlu1 %v550_v16, 264  ;;  %p1587_p10 = pnand %p1586_p2, %p1580_p12 }
  0x95   : > { %1330 = vmatpush3.bf16.xpose.msra.mxu0 %v1457_v2  ;;  %1367 = vmatpush3.bf16.xpose.msra.mxu1 %v1457_v2 }
  0x96   : > { %1331 = vmatprep.subr.bf16.mxu0 %v1458_v9  ;;  %1360 = vmatprep.subr.bf16.mxu1 %v1458_v9 }
  0x97   : > { %563 = vbcast.lane.b32.xlu0 %v561_v18, 256  ;;  %567 = vbcast.lane.b32.xlu1 %v561_v18, 264 }
  0x9b   : > { %574 = vbcast.lane.b32.xlu0 %v572_v21, 256  ;;  %578 = vbcast.lane.b32.xlu1 %v572_v21, 264 }
  0x9d   : > { %1332 = vmatpush3.bf16.xpose.msra.mxu0 %v1458_v9  ;;  %1368 = vmatpush3.bf16.xpose.msra.mxu1 %v1458_v9 }
  0x9e   : > { %1333 = vmatprep.subr.bf16.mxu0 %v1459_v15  ;;  %1361 = vmatprep.subr.bf16.mxu1 %v1459_v15 }
  0x9f   : > { %585 = vbcast.lane.b32.xlu0 %v583_v23, 256  ;;  %589 = vbcast.lane.b32.xlu1 %v583_v23, 264 }
  0xa3   : > { %600 = vbcast.lane.b32.xlu1 %v594_v26, 264  ;;  %596 = vbcast.lane.b32.xlu0 %v594_v26, 256 }
  0xa5   : > { %1334 = vmatpush3.bf16.xpose.msra.mxu0 %v1459_v15  ;;  %1369 = vmatpush3.bf16.xpose.msra.mxu1 %v1459_v15 }
  0xa6   : > { %1335 = vmatprep.subr.bf16.mxu0 %v1460_v20  ;;  %1362 = vmatprep.subr.bf16.mxu1 %v1460_v20 }
  0xa7   : > { %611 = vbcast.lane.b32.xlu1 %v605_v28, 264  ;;  %607 = vbcast.lane.b32.xlu0 %v605_v28, 256 }
  0xab   : > { %757 = vbcast.lane.b32.xlu1 %v755_v30, 256  ;;  %761 = vbcast.lane.b32.xlu0 %v755_v30, 264 }
  0xad   : > { %1336 = vmatpush3.bf16.xpose.msra.mxu0 %v1460_v20  ;;  %1370 = vmatpush3.bf16.xpose.msra.mxu1 %v1460_v20 }
  0xae   : > { %1337 = vmatprep.subr.bf16.mxu0 %v1461_v25  ;;  %1363 = vmatprep.subr.bf16.mxu1 %v1461_v25 }
  0xaf   : > { %768 = vbcast.lane.b32.xlu1 %v766_v31, 256  ;;  %779 = vbcast.lane.b32.xlu0 %v777_v32, 256 }
  0xb3   : > { %772 = vbcast.lane.b32.xlu1 %v766_v31, 264  ;;  %790 = vbcast.lane.b32.xlu0 %v788_v33, 256 }
  0xb5   : > { %1338 = vmatpush3.bf16.xpose.msra.mxu0 %v1461_v25  ;;  %1371 = vmatpush3.bf16.xpose.msra.mxu1 %v1461_v25 }
  0xb6   : > { %1339 = vmatprep.subr.bf16.mxu0 %v1462_v29  ;;  %1364 = vmatprep.subr.bf16.mxu1 %v1462_v29 }
  0xb7   : > { %783 = vbcast.lane.b32.xlu1 %v777_v32, 264  ;;  %801 = vbcast.lane.b32.xlu0 %v799_v38, 256 }
  0xbb   : > { %794 = vbcast.lane.b32.xlu1 %v788_v33, 264  ;;  %812 = vbcast.lane.b32.xlu0 %v810_v39, 256 }
  0xbd   : > { %1340 = vmatpush3.bf16.xpose.msra.mxu0 %v1462_v29  ;;  %1372 = vmatpush3.bf16.xpose.msra.mxu1 %v1462_v29 }
  0xbf   : > { %805 = vbcast.lane.b32.xlu1 %v799_v38, 264  ;;  %823 = vbcast.lane.b32.xlu0 %v821_v42, 256 }
  0xc3   : > { %816 = vbcast.lane.b32.xlu1 %v810_v39, 264  ;;  %834 = vbcast.lane.b32.xlu0 %v832_v43, 256 }
  0xc4   : > { %1342 = vmatmul.mubr.bf16.vlgmr.msra.gmra.mrb[0].mxu0 %v1465_v34  ;;  %1350 = vmatmul.mubr.bf16.vlgmr.msra.gmra.mrb[0].mxu1 %v1466_v35 }
  0xc5   : > { %1345 = vmatprep.mubr.bf16.mxu0 %v1467_v36  ;;  %1353 = vmatprep.mubr.bf16.mxu1 %v1468_v37 }
  0xc7   : > { %827 = vbcast.lane.b32.xlu1 %v821_v42, 264 }
  0xcb   : > { %838 = vbcast.lane.b32.xlu1 %v832_v43, 264 }
  0xcc   : > { %1346 = vmatmul.mubr.bf16.gmra.mrb[4].mxu0 %v1469_v40  ;;  %1354 = vmatmul.mubr.bf16.gmra.mrb[4].mxu1 %v1470_v41 }
  0xfc   : > { %v531_v44 = vpop.permute.xlu0 %530  ;;  %v542_v45 = vpop.permute.xlu1 %541 }
  0xfd   : > { %v615_v62 = vmul.f32 1e+09, %v542_v45  ;;  %v613_v2 = vmul.f32 1e+09, %v531_v44 }
 0x101   : > { %v535_v46 = vpop.permute.xlu0 %534  ;;  %v546_v47 = vpop.permute.xlu1 %545 }
 0x102   : > { %v616_v3 = vmul.f32 1e+09, %v546_v47  ;;  %v614_v16 = vmul.f32 1e+09, %v535_v46 }
 0x105   : > { %v1967_v48 = vpop.permute.xlu0 %552  ;;  %v557_v49 = vpop.permute.xlu1 %556 }
 0x106   : > { %v618_v27 = vmul.f32 1e+09, %v557_v49 }
 0x109   : > { %v564_v50 = vpop.permute.xlu0 %563  ;;  %v568_v51 = vpop.permute.xlu1 %567 }
 0x10a   : > { %v620_v39 = vmul.f32 1e+09, %v568_v51  ;;  %v619_v43 = vmul.f32 1e+09, %v564_v50 }
 0x10d   : > { %v575_v52 = vpop.permute.xlu0 %574  ;;  %v579_v55 = vpop.permute.xlu1 %578 }
 0x10e   : > { %v621_v7 = vmul.f32 1e+09, %v575_v52  ;;  %v622_v8 = vmul.f32 1e+09, %v579_v55  ;;  %v617_v52 = vmul.f32 1e+09, %v1967_v48 }
 0x111   : > { %v586_v56 = vpop.permute.xlu0 %585  ;;  %v590_v59 = vpop.permute.xlu1 %589 }
 0x112   : > { %v623_v63 = vmul.f32 1e+09, %v586_v56  ;;  %v624_v4 = vmul.f32 1e+09, %v590_v59 }
 0x115   : > { %v597_v60 = vpop.permute.xlu0 %596  ;;  %v601_v1 = vpop.permute.xlu1 %600 }
 0x116   : > { %v625_v31 = vmul.f32 1e+09, %v597_v60  ;;  %v626_v44 = vmul.f32 1e+09, %v601_v1 }
 0x119   : > { %v608_v5 = vpop.permute.xlu0 %607  ;;  %v612_v30 = vpop.permute.xlu1 %611 }
 0x11a   : > { %v627_v32 = vmul.f32 1e+09, %v608_v5  ;;  %v628_v40 = vmul.f32 1e+09, %v612_v30 }
 0x197   : > { %v1343_v9 = vpop.f32.mrb[0].mxu0  ;;  %v1351_v11 = vpop.f32.mrb[0].mxu1 }
 0x198   : > { %v633_v12 = vadd.f32 %v1343_v9, %v615_v62  ;;  %v641_v13 = vadd.f32 %v1351_v11, %v623_v63  ;;  %v461_v14 = vpop.f32.mrb[1].mxu0  ;;  %v493_v15 = vpop.f32.mrb[1].mxu1 }
 0x199   : > { %v631_v17 = vadd.f32 %v613_v2, %v461_v14  ;;  %v639_v18 = vadd.f32 %v621_v7, %v493_v15  ;;  %v1344_v19 = vpop.f32.mrb[2].mxu0  ;;  %v1352_v20 = vpop.f32.mrb[2].mxu1 }
 0x19a   : > { %v634_v21 = vadd.f32 %v1344_v19, %v616_v3  ;;  %v642_v22 = vadd.f32 %v1352_v20, %v624_v4  ;;  %v464_v23 = vpop.f32.mrb[3].mxu0  ;;  %v496_v24 = vpop.f32.mrb[3].mxu1  ;;  %v657_v25 = vadd.f32 %v641_v13, %v1977_v0  ;;  %v649_v26 = vadd.f32 %v633_v12, %v1977_v0 }
 0x19b   : > { %v632_v28 = vadd.f32 %v614_v16, %v464_v23  ;;  %v640_v29 = vadd.f32 %v622_v8, %v496_v24  ;;  %v655_v35 = vadd.f32 %v639_v18, %v1977_v0  ;;  %v647_v36 = vadd.f32 %v631_v17, %v1977_v0 }
 0x19c   : > { %683 = vmax.xlane.f32.xlu1 %v657_v25  ;;  %667 = vmax.xlane.f32.xlu0 %v649_v26  ;;  %v650_v33 = vadd.f32 %v634_v21, %v1977_v0  ;;  %v658_v34 = vadd.f32 %v642_v22, %v1977_v0 }
 0x19d   : > { %v648_v37 = vadd.f32 %v632_v28, %v1977_v0  ;;  %v1987_v38 = vadd.f32 %v640_v29, %v1977_v0 }
 0x19e   : > { %v702_v41 = vmax.f32 %v649_v26, %v650_v33  ;;  %v730_v42 = vmax.f32 %v657_v25, %v658_v34 }
 0x19f   : > { %v1347_v45 = vpop.f32.mrb[4].mxu0  ;;  %v1355_v46 = vpop.f32.mrb[4].mxu1  ;;  %v695_v47 = vmax.f32 %v647_v36, %v648_v37  ;;  %v723_v49 = vmax.f32 %v655_v35, %v1987_v38 }
 0x1a0   : > { %v645_v54 = vadd.f32 %v1355_v46, %v627_v32  ;;  %v477_v55 = vpop.f32.mrb[5].mxu0  ;;  %v509_v56 = vpop.f32.mrb[5].mxu1  ;;  %679 = vmax.xlane.f32.xlu1 %v655_v35  ;;  %663 = vmax.xlane.f32.xlu0 %v647_v36  ;;  %v703_v57 = vrot.slane %v702_v41, 4  ;;  %v731_v59 = vrot.slane %v730_v42, 4  ;;  %v637_v51 = vadd.f32 %v1347_v45, %v619_v43 }
 0x1a1   : > { %v643_v60 = vadd.f32 %v625_v31, %v509_v56  ;;  %v1348_v61 = vpop.f32.mrb[6].mxu0  ;;  %v1356_v62 = vpop.f32.mrb[6].mxu1  ;;  %v696_v50 = vrot.slane %v695_v47, 4  ;;  %v724_v63 = vrot.slane %v723_v49, 4  ;;  %v635_v1 = vadd.f32 %v617_v52, %v477_v55 }
 0x1a2   : > { %v638_v2 = vadd.f32 %v1348_v61, %v620_v39  ;;  %v646_v3 = vadd.f32 %v1356_v62, %v628_v40  ;;  %v480_v4 = vpop.f32.mrb[7].mxu0  ;;  %v512_v5 = vpop.f32.mrb[7].mxu1  ;;  %v704_v7 = vmax.f32 %v702_v41, %v703_v57  ;;  %v732_v12 = vmax.f32 %v730_v42, %v731_v59 }
 0x1a3   : > { %v636_v48 = vadd.f32 %v618_v27, %v480_v4  ;;  %v644_v8 = vadd.f32 %v626_v44, %v512_v5  ;;  %v697_v9 = vmax.f32 %v695_v47, %v696_v50  ;;  %v661_v13 = vadd.f32 %v645_v54, %v1977_v0 }
 0x1a4   : > { %665 = vmax.xlane.f32.xlu1 %v648_v37  ;;  %v705_v11 = vrot.slane %v704_v7, 2  ;;  %669 = vmax.xlane.f32.xlu0 %v650_v33  ;;  %v725_v14 = vmax.f32 %v723_v49, %v724_v63  ;;  %v653_v16 = vadd.f32 %v637_v51, %v1977_v0  ;;  %v654_v17 = vadd.f32 %v638_v2, %v1977_v0 }
 0x1a5   : > { %v698_v15 = vrot.slane %v697_v9, 2  ;;  %v659_v18 = vadd.f32 %v643_v60, %v1977_v0  ;;  %v651_v20 = vadd.f32 %v635_v1, %v1977_v0  ;;  %v662_v21 = vadd.f32 %v646_v3, %v1977_v0 }
 0x1a6   : > { %v706_v19 = vmax.f32 %v704_v7, %v705_v11  ;;  %v652_v22 = vadd.f32 %v636_v48, %v1977_v0  ;;  %v726_v24 = vrot.slane %v725_v14, 2  ;;  %v716_v25 = vmax.f32 %v653_v16, %v654_v17 }
 0x1a7   : > { %v699_v23 = vmax.f32 %v697_v9, %v698_v15  ;;  %v1999_v26 = vadd.f32 %v644_v8, %v1977_v0  ;;  %v733_v28 = vrot.slane %v732_v12, 2  ;;  %v744_v29 = vmax.f32 %v661_v13, %v662_v21 }
 0x1a8   : > { %v707_v27 = vrot.slane %v706_v19, 1  ;;  %675 = vmax.xlane.f32.xlu1 %v653_v16  ;;  %685 = vmax.xlane.f32.xlu0 %v658_v34  ;;  %v709_v30 = vmax.f32 %v651_v20, %v652_v22  ;;  %v717_v32 = vrot.slane %v716_v25, 4  ;;  %v727_v40 = vmax.f32 %v725_v14, %v726_v24 }
 0x1a9   : > { %v700_v31 = vrot.slane %v699_v23, 1  ;;  %v737_v33 = vmax.f32 %v659_v18, %v1999_v26  ;;  %v745_v36 = vrot.slane %v744_v29, 4  ;;  %v734_v43 = vmax.f32 %v732_v12, %v733_v28 }
 0x1aa   : > { %v708_v35 = vmax.f32 %v706_v19, %v707_v27  ;;  %v710_v37 = vrot.slane %v709_v30, 4  ;;  %v718_v41 = vmax.f32 %v716_v25, %v717_v32  ;;  %v1674_v49 = vmov 0  }
 0x1ab   : > { %v701_v39 = vmax.f32 %v699_v23, %v700_v31  ;;  %v738_v42 = vrot.slane %v737_v33, 4  ;;  %v746_v34 = vmax.f32 %v744_v29, %v745_v36  ;;  %1453 = vset.pattern.permute.xlu1 %v1674_v49  ;;  %1454 = vset.pattern.permute.xlu0 %v1674_v49  ;;  %v728_v55 = vrot.slane %v727_v40, 1  ;;  %v758_v29 = vpop.permute.xlu1 %757 }
 0x1ac   : > { %v1033_v0 = vmul.f32 %v1974_v58, %v708_v35  ;;  %691 = vmax.xlane.f32.xlu1 %v661_v13  ;;  %681 = vmax.xlane.f32.xlu0 %v1987_v38  ;;  %v719_v45 = vrot.slane %v718_v41, 2  ;;  %v711_v46 = vmax.f32 %v709_v30, %v710_v37  ;;  %v735_v51 = vrot.slane %v734_v43, 1 }
 0x1ad   : > { %v1032_v44 = vmul.f32 %v1974_v58, %v701_v39  ;;  %v739_v47 = vmax.f32 %v737_v33, %v738_v42  ;;  %v747_v54 = vrot.slane %v746_v34, 2  ;;  %v729_v1 = vmax.f32 %v727_v40, %v728_v55 }
 0x1ae   : > { %v1048_v52 = vrot.slane %v1033_v0, 7  ;;  %v720_v56 = vmax.f32 %v718_v41, %v719_v45  ;;  %v712_v57 = vrot.slane %v711_v46, 2  ;;  %v736_v5 = vmax.f32 %v734_v43, %v735_v51 }
 0x1af   : > { %v740_v59 = vrot.slane %v739_v47, 2  ;;  %v748_v60 = vmax.f32 %v746_v34, %v747_v54  ;;  %v1036_v11 = vmul.f32 %v1974_v58, %v729_v1  ;;  %v769_v30 = vpop.permute.xlu1 %768 }
 0x1b0   : > { %671 = vmax.xlane.f32.xlu1 %v651_v20  ;;  %677 = vmax.xlane.f32.xlu0 %v654_v17  ;;  %v1049_v38 = vsel %vm1010_vm1, %v1048_v52, %v1032_v44  ;;  %v721_v61 = vrot.slane %v720_v56, 1  ;;  %v713_v62 = vmax.f32 %v711_v46, %v712_v57  ;;  %v1037_v13 = vmul.f32 %v1974_v58, %v736_v5 }
 0x1b1   : > { %v741_v50 = vmax.f32 %v739_v47, %v740_v59  ;;  %v749_v63 = vrot.slane %v748_v60, 1  ;;  %v1054_v19 = vrot.slane %v1036_v11, 4 }
 0x1b2   : > { %v722_v2 = vmax.f32 %v720_v56, %v721_v61  ;;  %v714_v3 = vrot.slane %v713_v62, 1 }
 0x1b3   : > { %v742_v4 = vrot.slane %v741_v50, 1  ;;  %v750_v9 = vmax.f32 %v748_v60, %v749_v63  ;;  %v773_v31 = vpop.permute.xlu1 %772 }
 0x1b4   : > { %687 = vmax.xlane.f32.xlu1 %v659_v18  ;;  %693 = vmax.xlane.f32.xlu0 %v662_v21  ;;  %v715_v7 = vmax.f32 %v713_v62, %v714_v3  ;;  %v1035_v8 = vmul.f32 %v1974_v58, %v722_v2  ;;  %v1056_v21 = vrot.slane %v1037_v13, 3 }
 0x1b5   : > { %v743_v48 = vmax.f32 %v741_v50, %v742_v4  ;;  %v1039_v17 = vmul.f32 %v1974_v58, %v750_v9 }
 0x1b6   : > { %v1034_v12 = vmul.f32 %v1974_v58, %v715_v7  ;;  %v1052_v16 = vrot.slane %v1035_v8, 5 }
 0x1b7   : > { %v1038_v15 = vmul.f32 %v1974_v58, %v743_v48  ;;  %v1060_v25 = vrot.slane %v1039_v17, 1  ;;  %v784_v32 = vpop.permute.xlu1 %783  ;;  %v1029_v17 = vsel %vm1025_vm9, %v1940_v10, 0.0  ;;  %v938_v10 = vsub.s32 %v1971_v53, %v1934_v6 }
 0x1b8   : > { %673 = vmax.xlane.f32.xlu0 %v652_v22  ;;  %v1050_v14 = vrot.slane %v1034_v12, 6 }
 0x1b9   : > { %v1058_v23 = vrot.slane %v1038_v15, 2  ;;  %v1066_v15 = vsel %vm1065_vm8, %v1974_v58, 0.0  ;;  %v940_v58 = vadd.s32 4294967288, %v1971_v53 }
 0x1ba   : > { %v1051_v18 = vsel %vm1012_vm2, %v1050_v14, %v1049_v38 }
 0x1bb   : > { %v1053_v20 = vsel %vm1014_vm3, %v1052_v16, %v1051_v18  ;;  %v795_v35 = vpop.permute.xlu1 %794 }
 0x1bc   : > { %689 = vmax.xlane.f32.xlu0 %v1999_v26  ;;  %v1055_v22 = vsel %vm1016_vm4, %v1054_v19, %v1053_v20  ;;  %v762_v26 = vpop.permute.xlu0 %761 }
 0x1bd   : > { %v1057_v24 = vsel %vm1018_vm5, %v1056_v21, %v1055_v22 }
 0x1be   : > { %v1059_v27 = vsel %vm1020_vm6, %v1058_v23, %v1057_v24 }
 0x1bf   : > { %v2019_v28 = vsel %vm1022_vm7, %v1060_v25, %v1059_v27  ;;  %v806_v37 = vpop.permute.xlu1 %805 }
 0x1c0   : > { %v780_v33 = vpop.permute.xlu0 %779 }
 0x1c3   : > { %v817_v40 = vpop.permute.xlu1 %816 }
 0x1c4   : > { %v791_v36 = vpop.permute.xlu0 %790 }
 0x1c7   : > { %v828_v42 = vpop.permute.xlu1 %827 }
 0x1c8   : > { %v802_v39 = vpop.permute.xlu0 %801 }
 0x1cb   : > { %v839_v43 = vpop.permute.xlu1 %838 }
 0x1cc   : > { %v813_v41 = vpop.permute.xlu0 %812 }
 0x1d0   : > { %v824_v0 = vpop.permute.xlu0 %823 }
 0x1d4   : > { %v835_v34 = vpop.permute.xlu0 %834 }
 0x229   : > { %v684_v44 = vpop.xlane.xlu1 %683  ;;  %v668_v45 = vpop.xlane.xlu0 %667 }
 0x22a   : > { %v858_v46 = vmul.f32 %v769_v30, %v668_v45  ;;  %v866_v3 = vmul.f32 %v813_v41, %v684_v44  ;;  %v943_v30 = vsub.s32 %v940_v58, %v1934_v6 }
 0x22c   : > { %895 = vperm.xlu1 %1453, %v858_v46  }
 0x22d   : > { %v680_v47 = vpop.xlane.xlu1 %679  ;;  %v664_v49 = vpop.xlane.xlu0 %663 }
 0x22e   : > { %v856_v52 = vmul.f32 %v758_v29, %v664_v49  ;;  %v864_v61 = vmul.f32 %v802_v39, %v680_v47 }
 0x230   : > { %889 = vperm.xlu0 %1454, %v856_v52  }
 0x231   : > { %v666_v54 = vpop.xlane.xlu1 %665  ;;  %v670_v55 = vpop.xlane.xlu0 %669 }
 0x232   : > { %v857_v56 = vmul.f32 %v762_v26, %v666_v54  ;;  %v859_v57 = vmul.f32 %v773_v31, %v670_v55 }
 0x234   : > { %892 = vperm.xlu1 %1453, %v857_v56   ;;  %898 = vperm.xlu0 %1454, %v859_v57  }
 0x235   : > { %v676_v59 = vpop.xlane.xlu1 %675  ;;  %v686_v51 = vpop.xlane.xlu0 %685 }
 0x236   : > { %v862_v60 = vmul.f32 %v791_v36, %v676_v59  ;;  %v867_v4 = vmul.f32 %v817_v40, %v686_v51 }
 0x238   : > { %907 = vperm.xlu0 %1454, %v862_v60  }
 0x239   : > { %v692_v38 = vpop.xlane.xlu1 %691  ;;  %v682_v62 = vpop.xlane.xlu0 %681 }
 0x23a   : > { %v865_v63 = vmul.f32 %v806_v37, %v682_v62  ;;  %v870_v14 = vmul.f32 %v835_v34, %v692_v38 }
 0x23c   : > { %913 = vperm.xlu0 %1454, %v864_v61  }
 0x23d   : > { %v672_v50 = vpop.xlane.xlu1 %671  ;;  %v678_v2 = vpop.xlane.xlu0 %677 }
 0x23e   : > { %v860_v1 = vmul.f32 %v780_v33, %v672_v50  ;;  %v863_v9 = vmul.f32 %v795_v35, %v678_v2 }
 0x240   : > { %901 = vperm.xlu1 %1453, %v860_v1   ;;  %916 = vperm.xlu0 %1454, %v865_v63  }
 0x241   : > { %v688_v5 = vpop.xlane.xlu1 %687  ;;  %v694_v7 = vpop.xlane.xlu0 %693 }
 0x242   : > { %v868_v48 = vmul.f32 %v824_v0, %v688_v5  ;;  %v871_v16 = vmul.f32 %v839_v43, %v694_v7 }
 0x244   : > { %919 = vperm.xlu0 %1454, %v866_v3  }
 0x245   : > { %v674_v8 = vpop.xlane.xlu0 %673 }
 0x246   : > { %v861_v11 = vmul.f32 %v784_v32, %v674_v8 }
 0x248   : > { %922 = vperm.xlu0 %1454, %v867_v4  }
 0x249   : > { %v690_v12 = vpop.xlane.xlu0 %689 }
 0x24a   : > { %v869_v13 = vmul.f32 %v828_v42, %v690_v12 }
 0x24c   : > { %925 = vperm.xlu0 %1454, %v868_v48  }
 0x250   : > { %910 = vperm.xlu0 %1454, %v863_v9  }
 0x254   : > { %904 = vperm.xlu0 %1454, %v861_v11  }
 0x258   : > { %928 = vperm.xlu0 %1454, %v869_v13  }
 0x25c   : > { %931 = vperm.xlu0 %1454, %v870_v14  }
 0x264   : > { %1067 = vadd.xlane.f32.xlu1 %v1066_v15 }
 0x275   : > { %934 = vperm.xlu1 %1453, %v871_v16  }
 0x27b   : > { %1030 = vadd.xlane.f32.xlu0 %v1029_v17 }
 0x27f   : > { %1063 = vadd.xlane.f32.xlu0 %v2019_v28 }
 0x2ab   : > { %v896_v27 = vpop.permute.xlu1 %895 }
 0x2ac   : > { %v950_v36 = vrot.slane %v896_v27, %v938_v10 }
 0x2af   : > { %v890_v18 = vpop.permute.xlu0 %889 }
 0x2b0   : > { %v939_v37 = vrot.slane %v890_v18, %v938_v10 }
 0x2b3   : > { %v899_v19 = vpop.permute.xlu0 %898  ;;  %v893_v31 = vpop.permute.xlu1 %892 }
 0x2b4   : > { %v944_v28 = vrot.slane %v893_v31, %v943_v30  ;;  %v954_v32 = vrot.slane %v899_v19, %v943_v30 }
 0x2b6   : > { %v946_v40 = vsel %vm945_vm10, %v944_v28, %v939_v37  ;;  %v955_v41 = vsel %vm945_vm10, %v954_v32, %v950_v36 }
 0x2b7   : > { %v908_v20 = vpop.permute.xlu0 %907  ;;  %v1011_v43 = vsel %vm1010_vm1, %v955_v41, %v946_v40 }
 0x2b8   : > { %v968_v34 = vrot.slane %v908_v20, %v938_v10 }
 0x2bb   : > { %v914_v21 = vpop.permute.xlu0 %913 }
 0x2bc   : > { %v977_v46 = vrot.slane %v914_v21, %v938_v10 }
 0x2bf   : > { %v917_v22 = vpop.permute.xlu0 %916  ;;  %v902_v33 = vpop.permute.xlu1 %901 }
 0x2c0   : > { %v959_v39 = vrot.slane %v902_v33, %v938_v10  ;;  %v981_v53 = vrot.slane %v917_v22, %v943_v30 }
 0x2c2   : > { %v982_v52 = vsel %vm945_vm10, %v981_v53, %v977_v46 }
 0x2c3   : > { %v920_v23 = vpop.permute.xlu0 %919 }
 0x2c4   : > { %v986_v56 = vrot.slane %v920_v23, %v938_v10 }
 0x2c7   : > { %v923_v24 = vpop.permute.xlu0 %922 }
 0x2c8   : > { %v990_v49 = vrot.slane %v923_v24, %v943_v30 }
 0x2ca   : > { %v991_v38 = vsel %vm945_vm10, %v990_v49, %v986_v56 }
 0x2cb   : > { %v926_v25 = vpop.permute.xlu0 %925 }
 0x2cc   : > { %v995_v51 = vrot.slane %v926_v25, %v938_v10 }
 0x2cf   : > { %v911_v29 = vpop.permute.xlu0 %910 }
 0x2d0   : > { %v972_v0 = vrot.slane %v911_v29, %v943_v30 }
 0x2d2   : > { %v973_v45 = vsel %vm945_vm10, %v972_v0, %v968_v34 }
 0x2d3   : > { %v905_v26 = vpop.permute.xlu0 %904 }
 0x2d4   : > { %v963_v35 = vrot.slane %v905_v26, %v943_v30 }
 0x2d6   : > { %v964_v42 = vsel %vm945_vm10, %v963_v35, %v959_v39 }
 0x2d7   : > { %v1013_v6 = vsel %vm1012_vm2, %v964_v42, %v1011_v43  ;;  %v929_v44 = vpop.permute.xlu0 %928 }
 0x2d8   : > { %v1015_v47 = vsel %vm1014_vm3, %v973_v45, %v1013_v6  ;;  %v999_v54 = vrot.slane %v929_v44, %v943_v30 }
 0x2d9   : > { %v1017_v59 = vsel %vm1016_vm4, %v982_v52, %v1015_v47 }
 0x2da   : > { %v1000_v62 = vsel %vm945_vm10, %v999_v54, %v995_v51  ;;  %v1019_v63 = vsel %vm1018_vm5, %v991_v38, %v1017_v59 }
 0x2db   : > { %v932_v60 = vpop.permute.xlu0 %931  ;;  %v1021_v5 = vsel %vm1020_vm6, %v1000_v62, %v1019_v63 }
 0x2dc   : > { %v1004_v1 = vrot.slane %v932_v60, %v938_v10 }
 0x2f1   : > { %v1068_v55 = vpop.xlane.xlu1 %1067 }
 0x2f2   : > { %v1069_v57 = vrot.slane %v1068_v55, 4 }
 0x2f4   : > { %v1070_v61 = vadd.f32 %v1069_v57, %v1068_v55 }
 0x2f5   : > { %v935_v50 = vpop.permute.xlu1 %934 }
 0x2f6   : > { %v1071_v2 = vrot.slane %v1070_v61, 2  ;;  %v1008_v3 = vrot.slane %v935_v50, %v943_v30 }
 0x2f8   : > { %v1009_v4 = vsel %vm945_vm10, %v1008_v3, %v1004_v1  ;;  %v1072_v7 = vadd.f32 %v1071_v2, %v1070_v61 }
 0x2f9   : > { %v1023_v48 = vsel %vm1022_vm7, %v1009_v4, %v1021_v5 }
 0x2fa   : > { %v1026_v8 = vsel %vm1025_vm9, %v1023_v48, 0.0  ;;  %v1073_v9 = vrot.slane %v1072_v7, 1 }
 0x2fb   : > { %1027 = vadd.xlane.f32.xlu1 %v1026_v8 }
 0x2fc   : > { %v1074_v11 = vadd.f32 %v1073_v9, %v1072_v7 }
 0x2fe   : > { %1373 = vpush %v1074_v11 }
 0x308   : > { %v1031_v12 = vpop.xlane.xlu0 %1030 }
 0x309   : > { %v1076_v13 = vmax.f32 %v1031_v12, 1.0  ;;  %vm1092_vm12 = vcmp.gt.f32.partialorder %v1031_v12, 0.0 }
 0x30b   : > { %1471 = vrcp.f32 %v1076_v13 }
 0x30c   : > { %v1064_v17 = vpop.xlane.xlu0 %1063 }
 0x315   : > { %v1472_v15 = vpop.eup %1471 }
 0x32f   : > { %s1374_s10 = spop %1373 }
 0x330   : > { %s1079_s27 = smax.f32 %s1675_s20, %s1374_s10  ;;  %p1093_p13 = scmp.gt.f32.partialorder %s1374_s10, 0.0 }
 0x331   : > { %v1080_v14 = vstv %s1079_s27 }
 0x332   : > { %1473 = vrcp.f32 %v1080_v14  ;;  %s1094_s12 = scalar_select %p1093_p13, 1, 0 }
 0x334   : > { %v1095_v25 = vstv %s1094_s12 }
 0x335   : > { %vm1096_vm13 = vcmp.eq.s32.totalorder %v1095_v25, 1 }
 0x336   : > { %vm1097_vm14 = vmand %vm1092_vm12, %vm1096_vm13 }
 0x33c   : > { %v1474_v16 = vpop.eup %1473 }
 0x33d   : > { %v1082_v20 = vmul.f32 %v1474_v16, %v1064_v17 }
 0x388   : > { %v1028_v18 = vpop.xlane.xlu1 %1027 }
 0x389   : > { %v1078_v19 = vmul.f32 %v1472_v15, %v1028_v18 }
 0x38b   : > { %v1083_v21 = vadd.f32 %v1082_v20, %v1078_v19  ;;  %v1087_v24 = vmul.f32 2.0, %v1078_v19 }
 0x38d   : > { %v1084_v22 = vand.u32 2147483647, %v1083_v21  ;;  %v1088_v27 = vmul.f32 %v1087_v24, %v1082_v20 }
 0x38f   : > { %vm1085_vm11 = vcmp.gt.f32.partialorder %v1084_v22, 1e-08 }
 0x390   : > { %v1086_v23 = vsel %vm1085_vm11, %v1083_v21, 1.0 }
 0x391   : > { %1475 = vrcp.f32 %v1086_v23 }
 0x39b   : > { %v1476_v58 = vpop.eup %1475 }
 0x39c   : > { %v1090_v29 = vmul.f32 %v1476_v58, %v1088_v27 }
 0x39e   : > { %v1091_v30 = vsel %vm1085_vm11, %v1090_v29, 0.0 }
 0x39f   : > { %v1098_v31 = vsel %vm1097_vm14, %v1091_v30, 0.0 }
 0x3a0   : > { %1099 = vxpose.xlu0.b32.start.end [1/1] (short) (narrow) %v1098_v31, 8 }
 0x420   : > { %v1115_v10 = vpop.trf.xlu0 }
 0x421   : > { %1132 = vst.msk [vmem:[%s288_s6] sm:$0x1] %vm1131_vm15, %v1115_v10 }
 0x422   : > { %1590 = shalt.err (!%p1587_p10)
}
 0x423   : > { %s1591_s7 = scalar_lea.hbm %s2050_s14, 16  ;;  %s1595_s24 = scalar_lea.hbm %s2103_s4, 32 }
 0x424   : > { %p1592_p4 = scmp.ne.s32.totalorder %s2050_s14, %s1591_s7  ;;  %p1596_p5 = scmp.lt.u32.totalorder %s2050_s14, %s2103_s4 }
 0x425   : > { %p1597_p6 = scmp.lt.u32.totalorder %s1595_s24, %s1591_s7  ;;  %p1599_p8 = scmp.lt.u32.totalorder %s1591_s7, %s2050_s14 }
 0x426   : > { %p1593_p3 = pnand %p1592_p4, %p2127_p9 }
 0x427   : > { %p1598_p13 = por %p1597_p6, %p1596_p5 }
 0x428   : > { %p1594_p0 = pneg %p1593_p3 }
 0x429   : > { %p1600_p11 = por %p1599_p8, %p1598_p13 }
 0x42b   : > { %p1601_p12 = pnand %p1600_p11, %p1594_p0 }
 0x42d   : > { %1604 = shalt.err (!%p1601_p12)
}
 0x42e   : > { %1381 = dma.vmem_to_hbm [thread:$0]  (%p2127_p9), %s2052_s23, 16, %s2050_s14, %s1134_s16  }
 0x42f PF: > { %s1159_s30 = sand.u32 1, %s1645_s25   ;;  %p2128_p1 = scmp.ne.s32.totalorder %s2118_s13, 0 }
 0x430   : > { %p2129_p7 = scmp.ge.s32.totalorder %s1665_s0, 2  ;;  %s1160_s10 = scalar_lea.sflag [#allocation6], %s1159_s30 }
 0x432   : > { %p1394_p2 = pnand %p2129_p7, %p2128_p1 }
 0x434   : > { %1640 = dma.done.wait (!%p1394_p2), %s1160_s10, 16  }
 0x435   : > { %1642 = vsyncadd (!%p1394_p2), %s1160_s10, 4294967280  ;;  %s27_s0 = sadd.s32 1, %s1665_s0   ;;  %s2130_s20 = sld [smem:[#allocation15_spill]] }
 0x436   : > { %p24_p10 = scmp.ge.s32.totalorder %s27_s0, 4   ;;  %s2131_s27 = sld [smem:[#allocation17_spill]] }
 0x437   : > { %s2132_s11 = sld [smem:[#allocation16_spill]]  ;;  %s2133_s25 = smov %s1649_s26 }
 0x438   : > { %s2135_s28 = smov %s1661_s29  ;;  %26 = sbr.rel (!%p24_p10) target bundleno = 20 (0x14), region = 101 }
 0x43b   : > { %s2134_s26 = smov %s2130_s20 }
 0x43d   : > { %s2136_s29 = smov %s2132_s11 }
 0x43f   :  { %1164 = vsyncpa [#allocation5], 1 }
 0x440   :  { %1166 = vsyncpa [#allocation5 + $0x1], 1 }
 0x441   :  { %1167 = vsyncpa [#allocation8], 1 }
 0x442   :  { %1169 = vsyncpa [#allocation8 + $0x1], 1 }
 0x443   :  { %1170 = vsyncpa [#allocation6], 1 }
 0x444   :  { %1172 = vsyncpa [#allocation6 + $0x1], 1 }

</bundles_post_ra>
